<compile_context>
chip_gen: v7x
topology: tpu7x:2x2x1
jax: 0.10.0
libtpu: 0.0.40
codegen_flags: <defaults>
</compile_context>

<pallas_src>
import functools

import jax
import jax.numpy as jnp
from jax.experimental import pallas as pl
from jax.experimental.pallas import tpu as pltpu

# Tile budget: f32 worst case (TM,TK)+(TK,TN)+(TM,TN)*2 blocks, double-buffered,
# stays well under the 32 MiB scoped-VMEM default on every generation.
_TM_MAX = 512
_TN_MAX = 256
_TK_MAX = 1024


def _round_up(x, m):
    return ((x + m - 1) // m) * m


# --------------------------------------------------------------------------
# Fused tiled linear: out = act(x @ w + b) [* scale]
# --------------------------------------------------------------------------
def _linear_kernel(*refs, act, has_scale):
    if has_scale:
        x_ref, w_ref, b_ref, s_ref, o_ref, acc_ref = refs
    else:
        x_ref, w_ref, b_ref, o_ref, acc_ref = refs
        s_ref = None

    k = pl.program_id(2)

    @pl.when(k == 0)
    def _():
        acc_ref[...] = jnp.zeros_like(acc_ref)

    acc_ref[...] += jnp.dot(x_ref[...], w_ref[...],
                            preferred_element_type=jnp.float32)

    @pl.when(k == pl.num_programs(2) - 1)
    def _():
        out = acc_ref[...] + b_ref[...].astype(jnp.float32)
        if act == "relu":
            out = jnp.maximum(out, 0.0)
        if s_ref is not None:
            out = out * s_ref[...].astype(jnp.float32)
        o_ref[...] = out.astype(o_ref.dtype)


def linear_bias_act(x, w, b, *, act=None, scale=None, out_dtype=None):
    """x:(M,K) @ w:(K,N) + b:(N,), fused ReLU and optional per-element scale.

    Tiled over (M, N, K); accumulates in f32 regardless of input dtype.
    """
    M, K = x.shape
    Kw, N = w.shape
    assert K == Kw, (K, Kw)
    out_dtype = out_dtype or x.dtype

    tm = min(_TM_MAX, _round_up(M, 8))
    tn = min(_TN_MAX, _round_up(N, 128))
    tk = min(_TK_MAX, _round_up(K, 128))
    Mp, Np, Kp = _round_up(M, tm), _round_up(N, tn), _round_up(K, tk)

    xp = jnp.pad(x, ((0, Mp - M), (0, Kp - K)))
    wp = jnp.pad(w, ((0, Kp - K), (0, Np - N)))
    bp = jnp.pad(b.reshape(1, N), ((0, 0), (0, Np - N)))

    in_specs = [
        pl.BlockSpec((tm, tk), lambda i, j, k: (i, k)),
        pl.BlockSpec((tk, tn), lambda i, j, k: (k, j)),
        pl.BlockSpec((1, tn), lambda i, j, k: (0, j)),
    ]
    operands = [xp, wp, bp]
    if scale is not None:
        sp = jnp.pad(scale, ((0, Mp - M), (0, Np - N))).astype(out_dtype)
        in_specs.append(pl.BlockSpec((tm, tn), lambda i, j, k: (i, j)))
        operands.append(sp)

    out = pl.pallas_call(
        functools.partial(_linear_kernel, act=act, has_scale=scale is not None),
        out_shape=jax.ShapeDtypeStruct((Mp, Np), out_dtype),
        grid=(Mp // tm, Np // tn, Kp // tk),
        in_specs=in_specs,
        out_specs=pl.BlockSpec((tm, tn), lambda i, j, k: (i, j)),
        scratch_shapes=[pltpu.VMEM((tm, tn), jnp.float32)],
        compiler_params=pltpu.CompilerParams(
            dimension_semantics=("parallel", "parallel", "arbitrary"),
            vmem_limit_bytes=64 * 1024 * 1024,
        ),
    )(*operands)
    return out[:M, :N]


# --------------------------------------------------------------------------
# TwoMLPHead
# --------------------------------------------------------------------------
def init_two_mlp_head_params(key, in_channels, representation_size,
                             dtype=jnp.float32):
    ks = jax.random.split(key, 4)

    def u(k, shape, fan_in):
        bound = 1.0 / (fan_in ** 0.5)
        return jax.random.uniform(k, shape, jnp.float32, -bound, bound).astype(dtype)

    # Weights stored transposed, (in, out), so the kernel is a plain x @ w.
    return {
        "fc6_w": u(ks[0], (in_channels, representation_size), in_channels),
        "fc6_b": u(ks[1], (representation_size,), in_channels),
        "fc7_w": u(ks[2], (representation_size, representation_size),
                   representation_size),
        "fc7_b": u(ks[3], (representation_size,), representation_size),
    }


def two_mlp_head_forward(params, x, *, dropout_key=None, dropout_p=0.5):
    """x: (num_rois, C, H, W) or already-flattened (num_rois, in_channels)."""
    x2 = x.reshape(x.shape[0], -1)                       # flatten(start_dim=1)

    scale = None
    if dropout_key is not None and dropout_p > 0.0:
        rep = params["fc6_w"].shape[1]
        keep = jax.random.bernoulli(dropout_key, 1.0 - dropout_p,
                                    (x2.shape[0], rep))
        scale = keep.astype(jnp.float32) / (1.0 - dropout_p)   # inverted dropout

    # fc6 + ReLU, with the dropout mask fused into the epilogue.
    h = linear_bias_act(x2, params["fc6_w"], params["fc6_b"],
                        act="relu", scale=scale)
    # fc7 + ReLU.
    return linear_bias_act(h, params["fc7_w"], params["fc7_b"], act="relu")


def two_mlp_head_reference(params, x, *, dropout_key=None, dropout_p=0.5):
    """Pure-JAX reference (same compute dtype as x, f32 accumulation)."""
    compute_dtype = x.dtype

    def lin(a, w, b):
        return (jnp.dot(a, w.astype(a.dtype), preferred_element_type=jnp.float32)
                + b.astype(jnp.float32))

    x2 = x.reshape(x.shape[0], -1)
    h = jax.nn.relu(lin(x2, params["fc6_w"], params["fc6_b"]))
    if dropout_key is not None and dropout_p > 0.0:
        keep = jax.random.bernoulli(dropout_key, 1.0 - dropout_p, h.shape)
        h = h * (keep.astype(jnp.float32) / (1.0 - dropout_p))
    h = h.astype(compute_dtype)
    out = jax.nn.relu(lin(h, params["fc7_w"], params["fc7_b"]))
    return out.astype(compute_dtype)


# --------------------------------------------------------------------------
if __name__ == "__main__":
    key = jax.random.PRNGKey(0)
    k_x, k_p, k_drop = jax.random.split(key, 3)

    # Small shapes consistent with the box head: pooled RoI features of
    # (num_rois, C, H, W); real model uses C*H*W = 512*4*20 = 40960, rep = 2048.
    num_rois, C, H, W = 6, 32, 4, 20
    in_channels = C * H * W          # 2560 -> exercises the K grid axis (TK=1024)
    representation_size = 200        # non-multiple of 128 -> exercises N padding

    x = jax.random.normal(k_x, (num_rois, C, H, W), jnp.float32)
    params = init_two_mlp_head_params(k_p, in_channels, representation_size)

    # --- f32 path: tight correctness check vs pure-JAX reference ---
    out = jax.block_until_ready(
        two_mlp_head_forward(params, x, dropout_key=k_drop))
    ref = two_mlp_head_reference(params, x, dropout_key=k_drop)
    assert out.shape == (num_rois, representation_size)
    assert bool(jnp.allclose(out, ref, atol=1e-4, rtol=1e-4)), "f32 mismatch"

    # --- bf16 weights + activations (f32 accumulation inside the kernel) ---
    params_bf16 = jax.tree_util.tree_map(lambda a: a.astype(jnp.bfloat16), params)
    x_bf16 = x.astype(jnp.bfloat16)
    out_bf16 = jax.block_until_ready(
        two_mlp_head_forward(params_bf16, x_bf16, dropout_key=k_drop))
    ref_bf16 = two_mlp_head_reference(params_bf16, x_bf16, dropout_key=k_drop)
    assert out_bf16.shape == (num_rois, representation_size)
    assert bool(jnp.allclose(out_bf16.astype(jnp.float32),
                             ref_bf16.astype(jnp.float32),
                             atol=5e-2, rtol=5e-2)), "bf16 mismatch"

    print("KERNEL_OK")
</pallas_src>

<mosaic_0001>
module attributes {stable_mosaic.version = 11 : i64} {
  func.func @_linear_kernel(%arg0: i32, %arg1: i32, %arg2: i32, %arg3: memref<8x1024xf32, #tpu.memory_space<vmem>>, %arg4: memref<1024x256xf32, #tpu.memory_space<vmem>>, %arg5: memref<1x256xf32, #tpu.memory_space<vmem>>, %arg6: memref<8x256xf32, #tpu.memory_space<vmem>>, %arg7: memref<8x256xf32, #tpu.memory_space<vmem>>, %arg8: memref<8x256xf32, #tpu.memory_space<vmem>>) attributes {dimension_semantics = [#tpu.dimension_semantics<parallel>, #tpu.dimension_semantics<parallel>, #tpu.dimension_semantics<arbitrary>], iteration_bounds = array<i64: 1, 1, 3>, scalar_prefetch = 0 : i64, scratch_operands = 1 : i64, tpu.core_type = #tpu.core_type<tc>, window_params = [{transform_indices = @transform_0, window_bounds = array<i64: 8, 1024>}, {transform_indices = @transform_1, window_bounds = array<i64: 1024, 256>}, {transform_indices = @transform_2, window_bounds = array<i64: 1, 256>}, {transform_indices = @transform_3, window_bounds = array<i64: 8, 256>}, {transform_indices = @transform_4, window_bounds = array<i64: 8, 256>}]} {
    %c0_i32 = arith.constant 0 : i32
    %0 = arith.cmpi eq, %arg2, %c0_i32 : i32
    %1 = arith.extui %0 : i1 to i32
    %c0_i32_0 = arith.constant 0 : i32
    %2 = arith.cmpi ne, %1, %c0_i32_0 : i32
    scf.if %2 {
      %cst_9 = arith.constant 0.000000e+00 : f32
      %12 = vector.broadcast %cst_9 : f32 to vector<8x256xf32>
      %c0_10 = arith.constant 0 : index
      %c0_11 = arith.constant 0 : index
      %13 = vector.load %arg8[%c0_10, %c0_11] : memref<8x256xf32, #tpu.memory_space<vmem>>, vector<8x256xf32>
      tpu.vector_store %arg8[%c0_10, %c0_11], %12 {strides = array<i32>} : memref<8x256xf32, #tpu.memory_space<vmem>>, vector<8x256xf32>,
    } else {
    }
    %c0 = arith.constant 0 : index
    %c0_1 = arith.constant 0 : index
    %3 = vector.load %arg8[%c0, %c0_1] : memref<8x256xf32, #tpu.memory_space<vmem>>, vector<8x256xf32>
    %c0_2 = arith.constant 0 : index
    %c0_3 = arith.constant 0 : index
    %4 = vector.load %arg3[%c0_2, %c0_3] : memref<8x1024xf32, #tpu.memory_space<vmem>>, vector<8x1024xf32>
    %c0_4 = arith.constant 0 : index
    %c0_5 = arith.constant 0 : index
    %5 = vector.load %arg4[%c0_4, %c0_5] : memref<1024x256xf32, #tpu.memory_space<vmem>>, vector<1024x256xf32>
    %cst = arith.constant dense<0.000000e+00> : vector<8x256xf32>
    %6 = tpu.matmul %4, %5, %cst {dimension_numbers = #tpu.dot_dimension_numbers<[1], [0], [0], [1], [0, 0, 1, 1], [], []>} : vector<8x1024xf32>, vector<1024x256xf32>, vector<8x256xf32> -> vector<8x256xf32>
    %7 = arith.addf %3, %6 : vector<8x256xf32>
    %c0_6 = arith.constant 0 : index
    %c0_7 = arith.constant 0 : index
    %8 = vector.load %arg8[%c0_6, %c0_7] : memref<8x256xf32, #tpu.memory_space<vmem>>, vector<8x256xf32>
    tpu.vector_store %arg8[%c0_6, %c0_7], %7 {strides = array<i32>} : memref<8x256xf32, #tpu.memory_space<vmem>>, vector<8x256xf32>,
    %c2_i32 = arith.constant 2 : i32
    %9 = arith.cmpi eq, %arg2, %c2_i32 : i32
    %10 = arith.extui %9 : i1 to i32
    %c0_i32_8 = arith.constant 0 : i32
    %11 = arith.cmpi ne, %10, %c0_i32_8 : i32
    scf.if %11 {
      %c0_9 = arith.constant 0 : index
      %c0_10 = arith.constant 0 : index
      %12 = vector.load %arg8[%c0_9, %c0_10] : memref<8x256xf32, #tpu.memory_space<vmem>>, vector<8x256xf32>
      %c0_11 = arith.constant 0 : index
      %c0_12 = arith.constant 0 : index
      %13 = vector.load %arg5[%c0_11, %c0_12] : memref<1x256xf32, #tpu.memory_space<vmem>>, vector<1x256xf32>
      %14 = vector.broadcast %13 : vector<1x256xf32> to vector<8x256xf32>
      %15 = arith.addf %12, %14 : vector<8x256xf32>
      %cst_13 = arith.constant 0.000000e+00 : f32
      %16 = vector.broadcast %cst_13 : f32 to vector<8x256xf32>
      %17 = arith.maximumf %15, %16 : vector<8x256xf32>
      %c0_14 = arith.constant 0 : index
      %c0_15 = arith.constant 0 : index
      %18 = vector.load %arg6[%c0_14, %c0_15] : memref<8x256xf32, #tpu.memory_space<vmem>>, vector<8x256xf32>
      %19 = arith.mulf %17, %18 : vector<8x256xf32>
      %c0_16 = arith.constant 0 : index
      %c0_17 = arith.constant 0 : index
      %20 = vector.load %arg7[%c0_16, %c0_17] : memref<8x256xf32, #tpu.memory_space<vmem>>, vector<8x256xf32>
      tpu.vector_store %arg7[%c0_16, %c0_17], %19 {strides = array<i32>} : memref<8x256xf32, #tpu.memory_space<vmem>>, vector<8x256xf32>,
    } else {
    }
    return
  }
  func.func @transform_0(%arg0: i32, %arg1: i32, %arg2: i32) -> (i32, i32) {
    %c0_i32 = arith.constant 0 : i32
    return %arg0, %arg2 : i32, i32
  }
  func.func @transform_1(%arg0: i32, %arg1: i32, %arg2: i32) -> (i32, i32) {
    %c0_i32 = arith.constant 0 : i32
    return %arg2, %arg1 : i32, i32
  }
  func.func @transform_2(%arg0: i32, %arg1: i32, %arg2: i32) -> (i32, i32) {
    %c0_i32 = arith.constant 0 : i32
    %c0_i32_0 = arith.constant 0 : i32
    return %c0_i32, %arg1 : i32, i32
  }
  func.func @transform_3(%arg0: i32, %arg1: i32, %arg2: i32) -> (i32, i32) {
    %c0_i32 = arith.constant 0 : i32
    return %arg0, %arg1 : i32, i32
  }
  func.func @transform_4(%arg0: i32, %arg1: i32, %arg2: i32) -> (i32, i32) {
    %c0_i32 = arith.constant 0 : i32
    return %arg0, %arg1 : i32, i32
  }
}

</mosaic_0001>

<bundles_post_ra>
// kernel: tpu_custom_call.1
= control target key start
LH: loop header
LB: loop body
LE: loop exit
PB: predicated region body
PF: predicated region fallthrough
CT: control target
= control target key end

     0   :  { %9 = vsyncpa [#allocation4], 0  ;;  %s2202_s0 = inlined_call_operand.hbm [shape: f32[8,3072], index: 0, kind: input, shape index: {}]   ;;  %s2203_s1 = inlined_call_operand.hbm [shape: f32[3072,256], index: 1, kind: input, shape index: {}]   ;;  %s2204_s2 = inlined_call_operand.hbm [shape: f32[1,256], index: 2, kind: input, shape index: {}]   ;;  %s2205_s3 = inlined_call_operand.hbm [shape: f32[8,256], index: 3, kind: input, shape index: {}]   ;;  %s2206_s4 = inlined_call_operand.hbm [shape: f32[8,256], index: 4, kind: output, shape index: {}]  }
   0x1   :  { %11 = vsyncpa [#allocation4 + $0x1], 0 }
   0x2   :  { %12 = vsyncpa [#allocation7], 0 }
   0x3   :  { %14 = vsyncpa [#allocation7 + $0x1], 0 }
   0x4   :  { %15 = vsyncpa [#allocation10], 0 }
   0x5   :  { %16 = vsyncpa [#allocation5], 0  ;;  %s1672_s15 = smov 0   ;;  %s1674_s16 = smov 0  }
   0x6   :  { %s1676_s17 = smov 0   ;;  %s1678_s18 = smov 0  }
   0x7   :  { %s1680_s19 = smov 0   ;;  %s1682_s20 = smov 0  }
   0x8 LB: > { %s1701_s21 = sadd.s32 4294967295, %s1637_s20   ;;  %p63_p0 = scmp.ne.s32.totalorder %s1621_s16, %s1617_s15  ;;  %s1637_s20 = sphi %s1682_s20, %s22_s20   ;;  %s1633_s19 = sphi %s1680_s19, %s2224_s19   ;;  %s1629_s18 = sphi %s1678_s18, %s2223_s18   ;;  %s1625_s17 = sphi %s1676_s17, %s2222_s17   ;;  %s1621_s16 = sphi %s1674_s16, %s2221_s16   ;;  %s1617_s15 = sphi %s1672_s15, %s2220_s15  }
   0x9   : > { %p2207_p1 = scmp.eq.s32.totalorder %s1701_s21, 0  ;;  %p1051_p2 = scmp.ge.s32.totalorder %s1637_s20, 1 }
   0xa   : > { %p184_p3 = scmp.lt.s32.totalorder %s1637_s20, 4  ;;  %s1639_s24 = smov [#allocation8]  }
   0xb   : > { %p1709_p4 = por %p2207_p1, %p63_p0  ;;  %s200_s25 = sshll.u32 %s1639_s24, 4  ;;  %s201_s25 = int_to_ptr.vmem [resolvable:$true] %s200_s25 }
   0xc   : > { %p1713_p5 = pnand %p1051_p2, %p184_p3  ;;  %s1640_s26 = smov [#allocation9]  }
   0xd   : > { %s2210_s22 = scalar_select %p1709_p4, 1, 0 }
   0xe   : > { %s2211_s23 = scalar_select %p1713_p5, 1, 0 }
   0xf   : > { %p1354_p6 = pneg %p1713_p5  ;;  %s216_s27 = sshll.u32 %s1640_s26, 4  ;;  %s1725_s27 = int_to_ptr.vmem [resolvable:$true] %s216_s27 }
  0x10   : > { %s1429_s5 = scalar_lea.hbm %s2204_s2, 32 }
  0x11   : > { %p1721_p7 = pnand %p1354_p6, %p2207_p1  ;;  %p1430_p8 = scmp.ne.s32.totalorder %s2204_s2, %s1429_s5 }
  0x12   : > { %p1436_p12 = scmp.lt.u32.totalorder %s1429_s5, %s2204_s2 }
  0x13   : > { %p1431_p9 = pneg %p1721_p7 }
  0x15   : > { %p1432_p10 = pnand %p1431_p9, %p1430_p8 }
  0x17   : > { %p1433_p11 = pneg %p1432_p10 }
  0x19   : > { %p1438_p13 = pnand %p1436_p12, %p1433_p11 }
  0x1b   : > { %1441 = shalt.err (!%p1438_p13)
}
  0x1c   : > { %s1442_s10 = scalar_lea.vmem %s201_s25, 32  ;;  %p1450_p6 = scmp.lt.s32.totalorder %s201_s25, %s201_s25 }
  0x1d   : > { %p1443_p0 = scmp.ne.s32.totalorder %s201_s25, %s1442_s10  ;;  %p1451_p1 = scmp.lt.s32.totalorder %s1442_s10, %s1442_s10 }
  0x1f   : > { %p1445_p2 = pnand %p1443_p0, %p1431_p9  ;;  %p1452_p4 = por %p1451_p1, %p1450_p6 }
  0x21   : > { %p1446_p3 = pneg %p1445_p2 }
  0x23   : > { %p1453_p5 = pnand %p1452_p4, %p1446_p3 }
  0x25   : > { %1456 = shalt.err (!%p1453_p5)
}
  0x26   : > { %1357 = dma.hbm_to_vmem [thread:$0]  (!%p1721_p7), %s2204_s2, 32, %s201_s25, [#allocation7]  }
  0x27   : > { %s1457_s15 = scalar_lea.hbm %s2205_s3, 256 }
  0x28   : > { %p1458_p8 = scmp.ne.s32.totalorder %s2205_s3, %s1457_s15  ;;  %p1464_p5 = scmp.lt.u32.totalorder %s1457_s15, %s2205_s3 }
  0x2a   : > { %p1460_p1 = pnand %p1458_p8, %p1431_p9 }
  0x2c   : > { %p1461_p4 = pneg %p1460_p1 }
  0x2e   : > { %p1466_p10 = pnand %p1464_p5, %p1461_p4 }
  0x30   : > { %1469 = shalt.err (!%p1466_p10)
}
  0x31   : > { %s1470_s25 = scalar_lea.vmem %s1725_s27, 256  ;;  %p1478_p0 = scmp.lt.s32.totalorder %s1725_s27, %s1725_s27 }
  0x32   : > { %p1471_p11 = scmp.ne.s32.totalorder %s1725_s27, %s1470_s25  ;;  %p1479_p2 = scmp.lt.s32.totalorder %s1470_s25, %s1470_s25 }
  0x34   : > { %p1473_p12 = pnand %p1471_p11, %p1431_p9  ;;  %p1480_p3 = por %p1479_p2, %p1478_p0 }
  0x36   : > { %p1474_p13 = pneg %p1473_p12 }
  0x38   : > { %p1481_p6 = pnand %p1480_p3, %p1474_p13 }
  0x3a   : > { %1484 = shalt.err (!%p1481_p6)
}
  0x3b   : > { %1360 = dma.hbm_to_vmem [thread:$0]  (!%p1721_p7), %s2205_s3, 256, %s1725_s27, [#allocation10]  }
  0x3c   : > { %s34_s7 = sadd.s32 1, %s1633_s19  ;;  %s50_s8 = sadd.s32 1, %s1625_s17 }
  0x3d   : > { %p35_p9 = scmp.ge.s32.totalorder %s34_s7, 3  ;;  %p57_p8 = scmp.ne.s32.totalorder %s1625_s17, %s1621_s16 }
  0x3e   : > { %p58_p1 = scmp.eq.s32.totalorder %s1637_s20, 0  ;;  %p1370_p4 = scmp.lt.s32.totalorder %s1637_s20, 3 }
  0x3f   : > { %s2226_s7 = smov (%p35_p9, %s34_s7), 0  ;;  %s1783_s28 = sand.u32 1, %s1625_s17  }
  0x40   : > { %p59_p5 = por %p58_p1, %p57_p8  ;;  %s46_s9 = ssub.s32 %s1633_s19, %s2226_s7 }
  0x41   : > { %p48_p10 = scmp.eq.s32.totalorder %s46_s9, 0  ;;  %s1055_s27 = sshll.u32 %s1783_s28, 6 }
  0x42   : > { %s1073_s10 = sshll.u32 %s1633_s19, 10  ;;  %s231_s15 = scalar_lea.vmem [#allocation3], %s1055_s27 }
  0x43   : > { %s1790_s11 = scalar_select %p48_p10, %s1625_s17, %s50_s8  }
  0x44   : > { %s1795_s14 = scalar_lea.hbm %s2202_s0, %s1073_s10  ;;  %s241_s24 = sshll.u32 %s231_s15, 4  ;;  %s1797_s24 = int_to_ptr.vmem [resolvable:$true] %s241_s24 }
  0x45   : > { %p1801_p7 = pnand %p1370_p4, %p59_p5  ;;  %s1058_s29 = sshll.u32 %s1783_s28, 11 }
  0x46   : > { %s1075_s30 = sshll.u32 %s1633_s19, 15  ;;  %s228_s25 = scalar_lea.sflag [#allocation4], %s1783_s28 }
  0x47   : > { %s1485_s5 = scalar_lea.hbm %s1795_s14, 1024  ;;  %p1487_p12 = pneg %p1801_p7 }
  0x48   : > { %p1486_p11 = scmp.ne.s32.totalorder %s1795_s14, %s1485_s5  ;;  %s1490_s9 = scalar_lea.hbm %s2202_s0, 3072 }
  0x49   : > { %p1491_p2 = scmp.lt.u32.totalorder %s1795_s14, %s2202_s0  ;;  %p1492_p3 = scmp.lt.u32.totalorder %s1490_s9, %s1485_s5 }
  0x4a   : > { %p1488_p13 = pnand %p1487_p12, %p1486_p11  ;;  %p1494_p9 = scmp.lt.u32.totalorder %s1485_s5, %s1795_s14 }
  0x4b   : > { %p1493_p6 = por %p1492_p3, %p1491_p2 }
  0x4c   : > { %p1489_p0 = pneg %p1488_p13 }
  0x4d   : > { %p1495_p8 = por %p1494_p9, %p1493_p6 }
  0x4f   : > { %p1496_p1 = pnand %p1495_p8, %p1489_p0 }
  0x51   : > { %1499 = shalt.err (!%p1496_p1)
}
  0x52   : > { %s1500_s12 = scalar_lea.vmem %s1797_s24, 1024  ;;  %s1641_s13 = smov [#allocation3]  }
  0x53   : > { %p1501_p4 = scmp.ne.s32.totalorder %s1797_s24, %s1500_s12  ;;  %s1505_s15 = sshll.u32 %s1641_s13, 4  ;;  %s1506_s15 = int_to_ptr.vmem [resolvable:$false] %s1505_s15 }
  0x54   : > { %s1507_s6 = scalar_lea.vmem %s1506_s15, 2048  ;;  %p1508_p11 = scmp.lt.s32.totalorder %s1797_s24, %s1506_s15 }
  0x55   : > { %p1503_p5 = pnand %p1501_p4, %p1487_p12  ;;  %p1509_p13 = scmp.lt.s32.totalorder %s1507_s6, %s1500_s12 }
  0x57   : > { %p1504_p10 = pneg %p1503_p5  ;;  %p1510_p2 = por %p1509_p13, %p1508_p11 }
  0x59   : > { %p1511_p3 = pnand %p1510_p2, %p1504_p10 }
  0x5b   : > { %1514 = shalt.err (!%p1511_p3)
}
  0x5c   : > { %1364 = dma.hbm_to_vmem [thread:$0]  (!%p1801_p7), %s1795_s14, 1024, %s1797_s24, %s228_s25  }
  0x5d   : > { %s252_s5 = scalar_lea.vmem [#allocation6], %s1058_s29  ;;  %s248_s9 = sand.u32 1, %s1637_s20  }
  0x5e   : > { %s262_s8 = sshll.u32 %s252_s5, 4  ;;  %s1843_s12 = scalar_lea.hbm %s2203_s1, %s1075_s30  ;;  %s1836_s8 = int_to_ptr.vmem [resolvable:$true] %s262_s8 }
  0x5f   : > { %s1845_s13 = scalar_lea.sflag [#allocation7], %s248_s9  ;;  %s1515_s15 = scalar_lea.hbm %s1843_s12, 32768 }
  0x60   : > { %p1516_p0 = scmp.ne.s32.totalorder %s1843_s12, %s1515_s15  ;;  %s1520_s24 = scalar_lea.hbm %s2203_s1, 98304 }
  0x61   : > { %p1521_p8 = scmp.lt.u32.totalorder %s1843_s12, %s2203_s1  ;;  %p1522_p1 = scmp.lt.u32.totalorder %s1520_s24, %s1515_s15 }
  0x62   : > { %p1518_p6 = pnand %p1516_p0, %p1487_p12  ;;  %p1524_p5 = scmp.lt.u32.totalorder %s1515_s15, %s1843_s12 }
  0x63   : > { %p1523_p4 = por %p1522_p1, %p1521_p8 }
  0x64   : > { %p1519_p9 = pneg %p1518_p6 }
  0x65   : > { %p1525_p10 = por %p1524_p5, %p1523_p4 }
  0x67   : > { %p1526_p11 = pnand %p1525_p10, %p1519_p9 }
  0x69   : > { %1529 = shalt.err (!%p1526_p11)
}
  0x6a   : > { %s1530_s30 = scalar_lea.vmem %s1836_s8, 32768  ;;  %s1642_s6 = smov [#allocation6]  }
  0x6b   : > { %p1531_p13 = scmp.ne.s32.totalorder %s1836_s8, %s1530_s30  ;;  %s1535_s5 = sshll.u32 %s1642_s6, 4  ;;  %s1536_s5 = int_to_ptr.vmem [resolvable:$false] %s1535_s5 }
  0x6c   : > { %s1537_s9 = scalar_lea.vmem %s1536_s5, 65536  ;;  %p1538_p0 = scmp.lt.s32.totalorder %s1836_s8, %s1536_s5 }
  0x6d   : > { %p1533_p2 = pnand %p1531_p13, %p1487_p12  ;;  %p1539_p6 = scmp.lt.s32.totalorder %s1537_s9, %s1530_s30 }
  0x6f   : > { %p1534_p3 = pneg %p1533_p2  ;;  %p1540_p8 = por %p1539_p6, %p1538_p0 }
  0x71   : > { %p1541_p1 = pnand %p1540_p8, %p1534_p3 }
  0x73   : > { %1544 = shalt.err (!%p1541_p1)
}
  0x74   : > { %s1643_s27 = smov 256   ;;  %s1644_s10 = smov 16  }
  0x75   : > { %1367 = dma.hbm_to_vmem [thread:$0]  (!%p1801_p7), %s1843_s12, 32768, %s1836_s8, %s1845_s13, %s1643_s27, %s1643_s27, %s1644_s10  }
  0x76   : > { %p2214_p12 = scmp.ne.s32.totalorder %s2211_s23, 0 }
  0x77   : > { %s276_s15 = sand.u32 (!%p2214_p12), 1, %s1621_s16   ;;  %p2215_p9 = scmp.ne.s32.totalorder (!%p2214_p12), %s2210_s22, 0 }
  0x78   : > { %274 = sbr.rel (%p2214_p12) target bundleno = 536 (0x218), region = 36  ;;  %s1063_s28 = sshll.u32 (!%p2214_p12), %s276_s15, 6 }
  0x79   : > { %s277_s14 = scalar_lea.sflag (!%p2214_p12), [#allocation4], %s276_s15  ;;  %s1874_s24 = scalar_lea.vmem (!%p2214_p12), [#allocation3], %s1063_s28 }
  0x7f   : > { %1596 = dma.done.wait (%p2215_p9), %s277_s14, 1024  }
  0x80   : > { %1598 = vsyncadd (%p2215_p9), %s277_s14, 4294966272  ;;  %s285_s29 = sand.u32 1, %s1701_s21   ;;  %s1064_s26 = sshll.u32 %s276_s15, 11 }
  0x81   : > { %s286_s8 = scalar_lea.sflag [#allocation7], %s285_s29  ;;  %s1881_s12 = scalar_lea.vmem [#allocation6], %s1064_s26 }
  0x82   : > { %1600 = dma.done.wait (%p2215_p9), %s286_s8, 32768  }
  0x83   : > { %1602 = vsyncadd (%p2215_p9), %s286_s8, 4294934528  ;;  %p2216_p7 = scmp.eq.s32.totalorder %s1701_s21, 0 }
  0x85   : > { %1604 = dma.done.wait (%p2216_p7), [#allocation7], 32   ;;  %p2217_p4 = pmov %p2216_p7 }
  0x87   : > { %1606 = vsyncadd (%p2217_p4), [#allocation7], 4294967264  ;;  %p2218_p5 = pmov %p2217_p4 }
  0x88   : > { %p2219_p10 = pmov %p2217_p4 }
  0x89   : > { %1608 = dma.done.wait (%p2218_p5), [#allocation10], 256  }
  0x8a   : > { %1610 = vsyncadd (%p2219_p10), [#allocation10], 4294967040  ;;  %p1067_p11 = scmp.ne.s32.totalorder %s1629_s18, 0 }
  0x8b   : > { %v1645_v0 = vmov (!%p1067_p11), 0.0  }
  0x8c   : > { %331 = sbr.rel (%p1067_p11) target bundleno = 147 (0x93), region = 56  ;;  %332 = vst [vmem:[#allocation2] sm:$0xff] (!%p1067_p11), %v1645_v0  ;;  %333 = vst [vmem:[#allocation2 + $0x8] sm:$0xff] (!%p1067_p11), %v1645_v0 }
  0x93 PF: > { %v345_v1 = vld [vmem:[%s1881_s12 + $0x8] sm:$0xff]  ;;  %v347_v2 = vld [vmem:[%s1881_s12 + $0x18] sm:$0xff]  ;;  %v344_v6 = vld [vmem:[%s1881_s12] sm:$0xff]  ;;  %p1068_p13 = scmp.ne.s32.totalorder %s1629_s18, 2 }
  0x94   : > { %v473_v3 = vld [vmem:[%s1881_s12 + $0x408] sm:$0xff]  ;;  %v1076_v4 = vpack.c.bf16 %v347_v2, %v345_v1  ;;  %v475_v5 = vld [vmem:[%s1881_s12 + $0x418] sm:$0xff]  ;;  %v346_v7 = vld [vmem:[%s1881_s12 + $0x10] sm:$0xff] }
  0x95   : > { %v1204_v8 = vpack.c.bf16 %v475_v5, %v473_v3  ;;  %v1078_v9 = vpack.c.bf16 %v346_v7, %v344_v6  ;;  %v472_v10 = vld [vmem:[%s1881_s12 + $0x400] sm:$0xff]  ;;  %v474_v11 = vld [vmem:[%s1881_s12 + $0x410] sm:$0xff]  ;;  %v349_v12 = vld [vmem:[%s1881_s12 + $0x28] sm:$0xff] }
  0x96   : > { %1077 = vmatprep.subr.bf16.mxu1 %v1076_v4  ;;  %v1206_v13 = vpack.c.bf16 %v474_v11, %v472_v10  ;;  %v351_v14 = vld [vmem:[%s1881_s12 + $0x38] sm:$0xff]  ;;  %v477_v15 = vld [vmem:[%s1881_s12 + $0x428] sm:$0xff]  ;;  %v348_v19 = vld [vmem:[%s1881_s12 + $0x20] sm:$0xff] }
  0x97   : > { %v479_v16 = vld [vmem:[%s1881_s12 + $0x438] sm:$0xff]  ;;  %1205 = vmatprep.subr.bf16.mxu0 %v1204_v8  ;;  %1079 = vmatpush1.bf16.msra.mxu1 %v1078_v9  ;;  %v1080_v17 = vpack.c.bf16 %v351_v14, %v349_v12  ;;  %v350_v20 = vld [vmem:[%s1881_s12 + $0x30] sm:$0xff]  ;;  %v476_v21 = vld [vmem:[%s1881_s12 + $0x420] sm:$0xff] }
  0x98   : > { %v1208_v18 = vpack.c.bf16 %v479_v16, %v477_v15  ;;  %1207 = vmatpush1.bf16.msra.mxu0 %v1206_v13  ;;  %v1082_v22 = vpack.c.bf16 %v350_v20, %v348_v19  ;;  %v478_v23 = vld [vmem:[%s1881_s12 + $0x430] sm:$0xff]  ;;  %v353_v24 = vld [vmem:[%s1881_s12 + $0x48] sm:$0xff]  ;;  %v355_v25 = vld [vmem:[%s1881_s12 + $0x58] sm:$0xff] }
  0x99   : > { %1081 = vmatprep.subr.bf16.mxu1 %v1080_v17  ;;  %v1210_v26 = vpack.c.bf16 %v478_v23, %v476_v21  ;;  %v1084_v27 = vpack.c.bf16 %v355_v25, %v353_v24  ;;  %v481_v28 = vld [vmem:[%s1881_s12 + $0x448] sm:$0xff]  ;;  %v483_v29 = vld [vmem:[%s1881_s12 + $0x458] sm:$0xff]  ;;  %v352_v30 = vld [vmem:[%s1881_s12 + $0x40] sm:$0xff] }
  0x9a   : > { %1209 = vmatprep.subr.bf16.mxu0 %v1208_v18  ;;  %v1212_v31 = vpack.c.bf16 %v483_v29, %v481_v28  ;;  %v354_v32 = vld [vmem:[%s1881_s12 + $0x50] sm:$0xff]  ;;  %v480_v33 = vld [vmem:[%s1881_s12 + $0x440] sm:$0xff]  ;;  %v357_v36 = vld [vmem:[%s1881_s12 + $0x68] sm:$0xff] }
  0x9b   : > { %v482_v34 = vld [vmem:[%s1881_s12 + $0x450] sm:$0xff]  ;;  %1083 = vmatpush1.bf16.msra.mxu1 %v1082_v22  ;;  %v1086_v35 = vpack.c.bf16 %v354_v32, %v352_v30  ;;  %v359_v37 = vld [vmem:[%s1881_s12 + $0x78] sm:$0xff]  ;;  %v485_v38 = vld [vmem:[%s1881_s12 + $0x468] sm:$0xff] }
  0x9c   : > { %1211 = vmatpush1.bf16.msra.mxu0 %v1210_v26  ;;  %1085 = vmatprep.subr.bf16.mxu1 %v1084_v27  ;;  %v1214_v39 = vpack.c.bf16 %v482_v34, %v480_v33  ;;  %v1088_v40 = vpack.c.bf16 %v359_v37, %v357_v36  ;;  %v487_v41 = vld [vmem:[%s1881_s12 + $0x478] sm:$0xff]  ;;  %v356_v42 = vld [vmem:[%s1881_s12 + $0x60] sm:$0xff]  ;;  %v358_v43 = vld [vmem:[%s1881_s12 + $0x70] sm:$0xff] }
  0x9d   : > { %1213 = vmatprep.subr.bf16.mxu0 %v1212_v31  ;;  %v1216_v44 = vpack.c.bf16 %v487_v41, %v485_v38  ;;  %v484_v45 = vld [vmem:[%s1881_s12 + $0x460] sm:$0xff]  ;;  %v486_v46 = vld [vmem:[%s1881_s12 + $0x470] sm:$0xff]  ;;  %v361_v47 = vld [vmem:[%s1881_s12 + $0x88] sm:$0xff]  ;;  %v1090_v51 = vpack.c.bf16 %v358_v43, %v356_v42 }
  0x9e   : > { %v363_v48 = vld [vmem:[%s1881_s12 + $0x98] sm:$0xff]  ;;  %v489_v49 = vld [vmem:[%s1881_s12 + $0x488] sm:$0xff]  ;;  %v1218_v52 = vpack.c.bf16 %v486_v46, %v484_v45  ;;  %v360_v54 = vld [vmem:[%s1881_s12 + $0x80] sm:$0xff] }
  0x9f   : > { %v491_v50 = vld [vmem:[%s1881_s12 + $0x498] sm:$0xff]  ;;  %1087 = vmatpush1.bf16.msra.mxu1 %v1086_v35  ;;  %v1092_v53 = vpack.c.bf16 %v363_v48, %v361_v47  ;;  %v362_v55 = vld [vmem:[%s1881_s12 + $0x90] sm:$0xff]  ;;  %v488_v56 = vld [vmem:[%s1881_s12 + $0x480] sm:$0xff] }
  0xa0   : > { %1215 = vmatpush1.bf16.msra.mxu0 %v1214_v39  ;;  %1089 = vmatprep.subr.bf16.mxu1 %v1088_v40  ;;  %v1220_v57 = vpack.c.bf16 %v491_v50, %v489_v49  ;;  %v490_v58 = vld [vmem:[%s1881_s12 + $0x490] sm:$0xff]  ;;  %v365_v59 = vld [vmem:[%s1881_s12 + $0xa8] sm:$0xff]  ;;  %v367_v60 = vld [vmem:[%s1881_s12 + $0xb8] sm:$0xff]  ;;  %v1094_v63 = vpack.c.bf16 %v362_v55, %v360_v54 }
  0xa1   : > { %1217 = vmatprep.subr.bf16.mxu0 %v1216_v44  ;;  %v493_v61 = vld [vmem:[%s1881_s12 + $0x4a8] sm:$0xff]  ;;  %v495_v62 = vld [vmem:[%s1881_s12 + $0x4b8] sm:$0xff]  ;;  %v1222_v0 = vpack.c.bf16 %v490_v58, %v488_v56  ;;  %v1096_v1 = vpack.c.bf16 %v367_v60, %v365_v59  ;;  %v364_v2 = vld [vmem:[%s1881_s12 + $0xa0] sm:$0xff] }
  0xa2   : > { %v366_v3 = vld [vmem:[%s1881_s12 + $0xb0] sm:$0xff]  ;;  %v492_v4 = vld [vmem:[%s1881_s12 + $0x4a0] sm:$0xff]  ;;  %v1224_v5 = vpack.c.bf16 %v495_v62, %v493_v61  ;;  %v369_v7 = vld [vmem:[%s1881_s12 + $0xc8] sm:$0xff] }
  0xa3   : > { %1091 = vmatpush1.bf16.msra.mxu1 %v1090_v51  ;;  %v494_v6 = vld [vmem:[%s1881_s12 + $0x4b0] sm:$0xff]  ;;  %v371_v8 = vld [vmem:[%s1881_s12 + $0xd8] sm:$0xff]  ;;  %v497_v9 = vld [vmem:[%s1881_s12 + $0x4c8] sm:$0xff]  ;;  %v1098_v11 = vpack.c.bf16 %v366_v3, %v364_v2 }
  0xa4   : > { %1219 = vmatpush1.bf16.msra.mxu0 %v1218_v52  ;;  %1093 = vmatprep.subr.bf16.mxu1 %v1092_v53  ;;  %v499_v10 = vld [vmem:[%s1881_s12 + $0x4d8] sm:$0xff]  ;;  %v1226_v12 = vpack.c.bf16 %v494_v6, %v492_v4  ;;  %v1100_v13 = vpack.c.bf16 %v371_v8, %v369_v7  ;;  %v368_v14 = vld [vmem:[%s1881_s12 + $0xc0] sm:$0xff]  ;;  %v370_v15 = vld [vmem:[%s1881_s12 + $0xd0] sm:$0xff] }
  0xa5   : > { %1221 = vmatprep.subr.bf16.mxu0 %v1220_v57  ;;  %v496_v16 = vld [vmem:[%s1881_s12 + $0x4c0] sm:$0xff]  ;;  %v1228_v17 = vpack.c.bf16 %v499_v10, %v497_v9  ;;  %v498_v18 = vld [vmem:[%s1881_s12 + $0x4d0] sm:$0xff]  ;;  %v373_v19 = vld [vmem:[%s1881_s12 + $0xe8] sm:$0xff]  ;;  %v1102_v23 = vpack.c.bf16 %v370_v15, %v368_v14 }
  0xa6   : > { %v375_v20 = vld [vmem:[%s1881_s12 + $0xf8] sm:$0xff]  ;;  %v501_v21 = vld [vmem:[%s1881_s12 + $0x4e8] sm:$0xff]  ;;  %v1230_v24 = vpack.c.bf16 %v498_v18, %v496_v16  ;;  %v372_v26 = vld [vmem:[%s1881_s12 + $0xe0] sm:$0xff] }
  0xa7   : > { %1095 = vmatpush1.bf16.msra.mxu1 %v1094_v63  ;;  %v503_v22 = vld [vmem:[%s1881_s12 + $0x4f8] sm:$0xff]  ;;  %v1104_v25 = vpack.c.bf16 %v375_v20, %v373_v19  ;;  %v374_v27 = vld [vmem:[%s1881_s12 + $0xf0] sm:$0xff]  ;;  %v500_v28 = vld [vmem:[%s1881_s12 + $0x4e0] sm:$0xff] }
  0xa8   : > { %1223 = vmatpush1.bf16.msra.mxu0 %v1222_v0  ;;  %1097 = vmatprep.subr.bf16.mxu1 %v1096_v1  ;;  %v1232_v29 = vpack.c.bf16 %v503_v22, %v501_v21  ;;  %v502_v30 = vld [vmem:[%s1881_s12 + $0x4f0] sm:$0xff]  ;;  %v377_v31 = vld [vmem:[%s1881_s12 + $0x108] sm:$0xff]  ;;  %v379_v32 = vld [vmem:[%s1881_s12 + $0x118] sm:$0xff]  ;;  %v1106_v35 = vpack.c.bf16 %v374_v27, %v372_v26 }
  0xa9   : > { %1225 = vmatprep.subr.bf16.mxu0 %v1224_v5  ;;  %v505_v33 = vld [vmem:[%s1881_s12 + $0x508] sm:$0xff]  ;;  %v507_v34 = vld [vmem:[%s1881_s12 + $0x518] sm:$0xff]  ;;  %v1234_v36 = vpack.c.bf16 %v502_v30, %v500_v28  ;;  %v1108_v37 = vpack.c.bf16 %v379_v32, %v377_v31  ;;  %v376_v38 = vld [vmem:[%s1881_s12 + $0x100] sm:$0xff] }
  0xaa   : > { %v378_v39 = vld [vmem:[%s1881_s12 + $0x110] sm:$0xff]  ;;  %v504_v40 = vld [vmem:[%s1881_s12 + $0x500] sm:$0xff]  ;;  %v1236_v41 = vpack.c.bf16 %v507_v34, %v505_v33  ;;  %v381_v43 = vld [vmem:[%s1881_s12 + $0x128] sm:$0xff] }
  0xab   : > { %1099 = vmatpush1.bf16.msra.mxu1 %v1098_v11  ;;  %v506_v42 = vld [vmem:[%s1881_s12 + $0x510] sm:$0xff]  ;;  %v383_v44 = vld [vmem:[%s1881_s12 + $0x138] sm:$0xff]  ;;  %v509_v45 = vld [vmem:[%s1881_s12 + $0x528] sm:$0xff]  ;;  %v1110_v47 = vpack.c.bf16 %v378_v39, %v376_v38 }
  0xac   : > { %1227 = vmatpush1.bf16.msra.mxu0 %v1226_v12  ;;  %1101 = vmatprep.subr.bf16.mxu1 %v1100_v13  ;;  %v511_v46 = vld [vmem:[%s1881_s12 + $0x538] sm:$0xff]  ;;  %v1238_v48 = vpack.c.bf16 %v506_v42, %v504_v40  ;;  %v1112_v49 = vpack.c.bf16 %v383_v44, %v381_v43  ;;  %v380_v50 = vld [vmem:[%s1881_s12 + $0x120] sm:$0xff]  ;;  %v382_v51 = vld [vmem:[%s1881_s12 + $0x130] sm:$0xff] }
  0xad   : > { %1229 = vmatprep.subr.bf16.mxu0 %v1228_v17  ;;  %v508_v52 = vld [vmem:[%s1881_s12 + $0x520] sm:$0xff]  ;;  %v1240_v53 = vpack.c.bf16 %v511_v46, %v509_v45  ;;  %v510_v54 = vld [vmem:[%s1881_s12 + $0x530] sm:$0xff]  ;;  %v385_v55 = vld [vmem:[%s1881_s12 + $0x148] sm:$0xff]  ;;  %v1114_v59 = vpack.c.bf16 %v382_v51, %v380_v50 }
  0xae   : > { %v387_v56 = vld [vmem:[%s1881_s12 + $0x158] sm:$0xff]  ;;  %v513_v57 = vld [vmem:[%s1881_s12 + $0x548] sm:$0xff]  ;;  %v1242_v60 = vpack.c.bf16 %v510_v54, %v508_v52  ;;  %v384_v62 = vld [vmem:[%s1881_s12 + $0x140] sm:$0xff] }
  0xaf   : > { %1103 = vmatpush1.bf16.msra.mxu1 %v1102_v23  ;;  %v515_v58 = vld [vmem:[%s1881_s12 + $0x558] sm:$0xff]  ;;  %v1116_v61 = vpack.c.bf16 %v387_v56, %v385_v55  ;;  %v386_v63 = vld [vmem:[%s1881_s12 + $0x150] sm:$0xff]  ;;  %v512_v0 = vld [vmem:[%s1881_s12 + $0x540] sm:$0xff] }
  0xb0   : > { %1231 = vmatpush1.bf16.msra.mxu0 %v1230_v24  ;;  %1105 = vmatprep.subr.bf16.mxu1 %v1104_v25  ;;  %v1244_v1 = vpack.c.bf16 %v515_v58, %v513_v57  ;;  %v514_v2 = vld [vmem:[%s1881_s12 + $0x550] sm:$0xff]  ;;  %v389_v3 = vld [vmem:[%s1881_s12 + $0x168] sm:$0xff]  ;;  %v391_v4 = vld [vmem:[%s1881_s12 + $0x178] sm:$0xff]  ;;  %v1118_v7 = vpack.c.bf16 %v386_v63, %v384_v62 }
  0xb1   : > { %1233 = vmatprep.subr.bf16.mxu0 %v1232_v29  ;;  %v517_v5 = vld [vmem:[%s1881_s12 + $0x568] sm:$0xff]  ;;  %v519_v6 = vld [vmem:[%s1881_s12 + $0x578] sm:$0xff]  ;;  %v388_v8 = vld [vmem:[%s1881_s12 + $0x160] sm:$0xff]  ;;  %v1246_v9 = vpack.c.bf16 %v514_v2, %v512_v0  ;;  %v1120_v10 = vpack.c.bf16 %v391_v4, %v389_v3 }
  0xb2   : > { %v390_v11 = vld [vmem:[%s1881_s12 + $0x170] sm:$0xff]  ;;  %v516_v12 = vld [vmem:[%s1881_s12 + $0x560] sm:$0xff]  ;;  %v1248_v14 = vpack.c.bf16 %v519_v6, %v517_v5  ;;  %v393_v15 = vld [vmem:[%s1881_s12 + $0x188] sm:$0xff] }
  0xb3   : > { %1107 = vmatpush1.bf16.msra.mxu1 %v1106_v35  ;;  %v518_v13 = vld [vmem:[%s1881_s12 + $0x570] sm:$0xff]  ;;  %v395_v16 = vld [vmem:[%s1881_s12 + $0x198] sm:$0xff]  ;;  %v337_v17 = vld [vmem:[%s1874_s24 + $0x8] sm:$0xff]  ;;  %v1122_v21 = vpack.c.bf16 %v390_v11, %v388_v8 }
  0xb4   : > { %1235 = vmatpush1.bf16.msra.mxu0 %v1234_v36  ;;  %1109 = vmatprep.subr.bf16.mxu1 %v1108_v37  ;;  %v521_v18 = vld [vmem:[%s1881_s12 + $0x588] sm:$0xff]  ;;  %v523_v19 = vld [vmem:[%s1881_s12 + $0x598] sm:$0xff]  ;;  %v1250_v22 = vpack.c.bf16 %v518_v13, %v516_v12  ;;  %v1124_v23 = vpack.c.bf16 %v395_v16, %v393_v15  ;;  %v392_v24 = vld [vmem:[%s1881_s12 + $0x180] sm:$0xff] }
  0xb5   : > { %1237 = vmatprep.subr.bf16.mxu0 %v1236_v41  ;;  %664 = vmatprep.mubr.f32.mxu1 %v337_v17  ;;  %v341_v20 = vld [vmem:[%s1874_s24 + $0x28] sm:$0xff]  ;;  %v394_v25 = vld [vmem:[%s1881_s12 + $0x190] sm:$0xff]  ;;  %v520_v26 = vld [vmem:[%s1881_s12 + $0x580] sm:$0xff]  ;;  %v1252_v27 = vpack.c.bf16 %v523_v19, %v521_v18 }
  0xb6   : > { %806 = vmatprep.mubr.f32.mxu0 %v341_v20  ;;  %v522_v28 = vld [vmem:[%s1881_s12 + $0x590] sm:$0xff]  ;;  %v397_v29 = vld [vmem:[%s1881_s12 + $0x1a8] sm:$0xff]  ;;  %v399_v30 = vld [vmem:[%s1881_s12 + $0x1b8] sm:$0xff]  ;;  %v1126_v33 = vpack.c.bf16 %v394_v25, %v392_v24 }
  0xb7   : > { %1111 = vmatpush1.bf16.msra.mxu1 %v1110_v47  ;;  %v525_v31 = vld [vmem:[%s1881_s12 + $0x5a8] sm:$0xff]  ;;  %v527_v32 = vld [vmem:[%s1881_s12 + $0x5b8] sm:$0xff]  ;;  %v1254_v34 = vpack.c.bf16 %v522_v28, %v520_v26  ;;  %v1128_v35 = vpack.c.bf16 %v399_v30, %v397_v29  ;;  %v396_v36 = vld [vmem:[%s1881_s12 + $0x1a0] sm:$0xff] }
  0xb8   : > { %1239 = vmatpush1.bf16.msra.mxu0 %v1238_v48  ;;  %1113 = vmatprep.subr.bf16.mxu1 %v1112_v49  ;;  %v398_v37 = vld [vmem:[%s1881_s12 + $0x1b0] sm:$0xff]  ;;  %v524_v38 = vld [vmem:[%s1881_s12 + $0x5a0] sm:$0xff]  ;;  %v1256_v39 = vpack.c.bf16 %v527_v32, %v525_v31  ;;  %v401_v41 = vld [vmem:[%s1881_s12 + $0x1c8] sm:$0xff] }
  0xb9   : > { %1241 = vmatprep.subr.bf16.mxu0 %v1240_v53  ;;  %v526_v40 = vld [vmem:[%s1881_s12 + $0x5b0] sm:$0xff]  ;;  %v403_v42 = vld [vmem:[%s1881_s12 + $0x1d8] sm:$0xff]  ;;  %v529_v43 = vld [vmem:[%s1881_s12 + $0x5c8] sm:$0xff]  ;;  %v1130_v45 = vpack.c.bf16 %v398_v37, %v396_v36 }
  0xba   : > { %v531_v44 = vld [vmem:[%s1881_s12 + $0x5d8] sm:$0xff]  ;;  %v1258_v46 = vpack.c.bf16 %v526_v40, %v524_v38  ;;  %v1132_v47 = vpack.c.bf16 %v403_v42, %v401_v41  ;;  %v400_v48 = vld [vmem:[%s1881_s12 + $0x1c0] sm:$0xff]  ;;  %v402_v49 = vld [vmem:[%s1881_s12 + $0x1d0] sm:$0xff] }
  0xbb   : > { %1115 = vmatpush1.bf16.msra.mxu1 %v1114_v59  ;;  %v528_v50 = vld [vmem:[%s1881_s12 + $0x5c0] sm:$0xff]  ;;  %v1260_v51 = vpack.c.bf16 %v531_v44, %v529_v43  ;;  %v530_v52 = vld [vmem:[%s1881_s12 + $0x5d0] sm:$0xff]  ;;  %v405_v53 = vld [vmem:[%s1881_s12 + $0x1e8] sm:$0xff]  ;;  %v1134_v57 = vpack.c.bf16 %v402_v49, %v400_v48 }
  0xbc   : > { %1243 = vmatpush1.bf16.msra.mxu0 %v1242_v60  ;;  %1117 = vmatprep.subr.bf16.mxu1 %v1116_v61  ;;  %v407_v54 = vld [vmem:[%s1881_s12 + $0x1f8] sm:$0xff]  ;;  %v533_v55 = vld [vmem:[%s1881_s12 + $0x5e8] sm:$0xff]  ;;  %v1262_v58 = vpack.c.bf16 %v530_v52, %v528_v50  ;;  %v404_v60 = vld [vmem:[%s1881_s12 + $0x1e0] sm:$0xff] }
  0xbd   : > { %1245 = vmatprep.subr.bf16.mxu0 %v1244_v1  ;;  %v535_v56 = vld [vmem:[%s1881_s12 + $0x5f8] sm:$0xff]  ;;  %v1136_v59 = vpack.c.bf16 %v407_v54, %v405_v53  ;;  %v406_v61 = vld [vmem:[%s1881_s12 + $0x1f0] sm:$0xff]  ;;  %v532_v62 = vld [vmem:[%s1881_s12 + $0x5e0] sm:$0xff] }
  0xbe   : > { %v1264_v63 = vpack.c.bf16 %v535_v56, %v533_v55  ;;  %v534_v0 = vld [vmem:[%s1881_s12 + $0x5f0] sm:$0xff]  ;;  %v409_v1 = vld [vmem:[%s1881_s12 + $0x208] sm:$0xff]  ;;  %v411_v2 = vld [vmem:[%s1881_s12 + $0x218] sm:$0xff]  ;;  %v1138_v5 = vpack.c.bf16 %v406_v61, %v404_v60 }
  0xbf   : > { %1119 = vmatpush1.bf16.msra.mxu1 %v1118_v7  ;;  %v537_v3 = vld [vmem:[%s1881_s12 + $0x608] sm:$0xff]  ;;  %v539_v4 = vld [vmem:[%s1881_s12 + $0x618] sm:$0xff]  ;;  %v1266_v6 = vpack.c.bf16 %v534_v0, %v532_v62  ;;  %v1140_v7 = vpack.c.bf16 %v411_v2, %v409_v1  ;;  %v408_v8 = vld [vmem:[%s1881_s12 + $0x200] sm:$0xff] }
  0xc0   : > { %1247 = vmatpush1.bf16.msra.mxu0 %v1246_v9  ;;  %1121 = vmatprep.subr.bf16.mxu1 %v1120_v10  ;;  %v410_v9 = vld [vmem:[%s1881_s12 + $0x210] sm:$0xff]  ;;  %v536_v10 = vld [vmem:[%s1881_s12 + $0x600] sm:$0xff]  ;;  %v1268_v11 = vpack.c.bf16 %v539_v4, %v537_v3  ;;  %v413_v13 = vld [vmem:[%s1881_s12 + $0x228] sm:$0xff] }
  0xc1   : > { %1249 = vmatprep.subr.bf16.mxu0 %v1248_v14  ;;  %v538_v12 = vld [vmem:[%s1881_s12 + $0x610] sm:$0xff]  ;;  %v415_v14 = vld [vmem:[%s1881_s12 + $0x238] sm:$0xff]  ;;  %v541_v15 = vld [vmem:[%s1881_s12 + $0x628] sm:$0xff]  ;;  %v1142_v18 = vpack.c.bf16 %v410_v9, %v408_v8 }
  0xc2   : > { %v543_v16 = vld [vmem:[%s1881_s12 + $0x638] sm:$0xff]  ;;  %v336_v17 = vld [vmem:[%s1874_s24] sm:$0xff]  ;;  %v1270_v20 = vpack.c.bf16 %v538_v12, %v536_v10  ;;  %v542_v26 = vld [vmem:[%s1881_s12 + $0x630] sm:$0xff] }
  0xc3   : > { %1123 = vmatpush1.bf16.msra.mxu1 %v1122_v21  ;;  %v340_v19 = vld [vmem:[%s1874_s24 + $0x20] sm:$0xff]  ;;  %v1144_v21 = vpack.c.bf16 %v415_v14, %v413_v13  ;;  %v1272_v25 = vpack.c.bf16 %v543_v16, %v541_v15  ;;  %v419_v28 = vld [vmem:[%s1881_s12 + $0x258] sm:$0xff]  ;;  %v545_v29 = vld [vmem:[%s1881_s12 + $0x648] sm:$0xff] }
  0xc4   : > { %1251 = vmatpush1.bf16.msra.mxu0 %v1250_v22  ;;  %1125 = vmatprep.subr.bf16.mxu1 %v1124_v23  ;;  %v412_v22 = vld [vmem:[%s1881_s12 + $0x220] sm:$0xff]  ;;  %v414_v23 = vld [vmem:[%s1881_s12 + $0x230] sm:$0xff]  ;;  %v547_v30 = vld [vmem:[%s1881_s12 + $0x658] sm:$0xff] }
  0xc5   : > { %1253 = vmatprep.subr.bf16.mxu0 %v1252_v27  ;;  %v540_v24 = vld [vmem:[%s1881_s12 + $0x620] sm:$0xff]  ;;  %v417_v27 = vld [vmem:[%s1881_s12 + $0x248] sm:$0xff]  ;;  %v1146_v31 = vpack.c.bf16 %v414_v23, %v412_v22  ;;  %v1276_v37 = vpack.c.bf16 %v547_v30, %v545_v29  ;;  %v546_v38 = vld [vmem:[%s1881_s12 + $0x650] sm:$0xff] }
  0xc6   : > { %v1274_v32 = vpack.c.bf16 %v542_v26, %v540_v24  ;;  %v544_v36 = vld [vmem:[%s1881_s12 + $0x640] sm:$0xff]  ;;  %v423_v40 = vld [vmem:[%s1881_s12 + $0x278] sm:$0xff]  ;;  %v549_v41 = vld [vmem:[%s1881_s12 + $0x668] sm:$0xff] }
  0xc7   : > { %1127 = vmatpush1.bf16.msra.mxu1 %v1126_v33  ;;  %v1148_v33 = vpack.c.bf16 %v419_v28, %v417_v27  ;;  %v551_v42 = vld [vmem:[%s1881_s12 + $0x678] sm:$0xff]  ;;  %v1278_v44 = vpack.c.bf16 %v546_v38, %v544_v36  ;;  %v548_v48 = vld [vmem:[%s1881_s12 + $0x660] sm:$0xff]  ;;  %v550_v50 = vld [vmem:[%s1881_s12 + $0x670] sm:$0xff] }
  0xc8   : > { %1255 = vmatpush1.bf16.msra.mxu0 %v1254_v34  ;;  %1129 = vmatprep.subr.bf16.mxu1 %v1128_v35  ;;  %v416_v34 = vld [vmem:[%s1881_s12 + $0x240] sm:$0xff]  ;;  %v418_v35 = vld [vmem:[%s1881_s12 + $0x250] sm:$0xff]  ;;  %v1280_v49 = vpack.c.bf16 %v551_v42, %v549_v41  ;;  %v427_v52 = vld [vmem:[%s1881_s12 + $0x298] sm:$0xff]  ;;  %v1282_v56 = vpack.c.bf16 %v550_v50, %v548_v48 }
  0xc9   : > { %1257 = vmatprep.subr.bf16.mxu0 %v1256_v39  ;;  %v421_v39 = vld [vmem:[%s1881_s12 + $0x268] sm:$0xff]  ;;  %v1150_v43 = vpack.c.bf16 %v418_v35, %v416_v34  ;;  %v555_v54 = vld [vmem:[%s1881_s12 + $0x698] sm:$0xff]  ;;  %v552_v60 = vld [vmem:[%s1881_s12 + $0x680] sm:$0xff] }
  0xca   : > { %v553_v53 = vld [vmem:[%s1881_s12 + $0x688] sm:$0xff]  ;;  %v554_v62 = vld [vmem:[%s1881_s12 + $0x690] sm:$0xff]  ;;  %v431_v0 = vld [vmem:[%s1881_s12 + $0x2b8] sm:$0xff] }
  0xcb   : > { %1131 = vmatpush1.bf16.msra.mxu1 %v1130_v45  ;;  %v1152_v45 = vpack.c.bf16 %v423_v40, %v421_v39  ;;  %v1284_v61 = vpack.c.bf16 %v555_v54, %v553_v53  ;;  %v557_v1 = vld [vmem:[%s1881_s12 + $0x6a8] sm:$0xff]  ;;  %v559_v2 = vld [vmem:[%s1881_s12 + $0x6b8] sm:$0xff]  ;;  %v1286_v4 = vpack.c.bf16 %v554_v62, %v552_v60  ;;  %v556_v8 = vld [vmem:[%s1881_s12 + $0x6a0] sm:$0xff] }
  0xcc   : > { %1259 = vmatpush1.bf16.msra.mxu0 %v1258_v46  ;;  %1133 = vmatprep.subr.bf16.mxu1 %v1132_v47  ;;  %v420_v46 = vld [vmem:[%s1881_s12 + $0x260] sm:$0xff]  ;;  %v422_v47 = vld [vmem:[%s1881_s12 + $0x270] sm:$0xff]  ;;  %v1288_v9 = vpack.c.bf16 %v559_v2, %v557_v1  ;;  %v435_v12 = vld [vmem:[%s1881_s12 + $0x2d8] sm:$0xff] }
  0xcd   : > { %1261 = vmatprep.subr.bf16.mxu0 %v1260_v51  ;;  %v425_v51 = vld [vmem:[%s1881_s12 + $0x288] sm:$0xff]  ;;  %v1154_v55 = vpack.c.bf16 %v422_v47, %v420_v46  ;;  %v558_v10 = vld [vmem:[%s1881_s12 + $0x6b0] sm:$0xff]  ;;  %v563_v14 = vld [vmem:[%s1881_s12 + $0x6d8] sm:$0xff] }
  0xce   : > { %v561_v13 = vld [vmem:[%s1881_s12 + $0x6c8] sm:$0xff]  ;;  %v432_v16 = vld [vmem:[%s1881_s12 + $0x2c0] sm:$0xff]  ;;  %v439_v24 = vld [vmem:[%s1881_s12 + $0x2f8] sm:$0xff] }
  0xcf   : > { %1135 = vmatpush1.bf16.msra.mxu1 %v1134_v57  ;;  %v1156_v57 = vpack.c.bf16 %v427_v52, %v425_v51  ;;  %v1292_v22 = vpack.c.bf16 %v563_v14, %v561_v13  ;;  %v437_v23 = vld [vmem:[%s1881_s12 + $0x2e8] sm:$0xff]  ;;  %v567_v27 = vld [vmem:[%s1881_s12 + $0x6f8] sm:$0xff]  ;;  %v564_v34 = vld [vmem:[%s1881_s12 + $0x6e0] sm:$0xff] }
  0xd0   : > { %1263 = vmatpush1.bf16.msra.mxu0 %v1262_v58  ;;  %1137 = vmatprep.subr.bf16.mxu1 %v1136_v59  ;;  %v424_v58 = vld [vmem:[%s1881_s12 + $0x280] sm:$0xff]  ;;  %v426_v59 = vld [vmem:[%s1881_s12 + $0x290] sm:$0xff]  ;;  %v565_v26 = vld [vmem:[%s1881_s12 + $0x6e8] sm:$0xff] }
  0xd1   : > { %1265 = vmatprep.subr.bf16.mxu0 %v1264_v63  ;;  %v429_v63 = vld [vmem:[%s1881_s12 + $0x2a8] sm:$0xff]  ;;  %v1158_v3 = vpack.c.bf16 %v426_v59, %v424_v58  ;;  %v343_v28 = vld [vmem:[%s1874_s24 + $0x38] sm:$0xff]  ;;  %v1296_v35 = vpack.c.bf16 %v567_v27, %v565_v26  ;;  %v566_v36 = vld [vmem:[%s1881_s12 + $0x6f0] sm:$0xff] }
  0xd2   : > { %v443_v38 = vld [vmem:[%s1881_s12 + $0x318] sm:$0xff]  ;;  %v569_v39 = vld [vmem:[%s1881_s12 + $0x708] sm:$0xff]  ;;  %v1298_v42 = vpack.c.bf16 %v566_v36, %v564_v34  ;;  %v568_v46 = vld [vmem:[%s1881_s12 + $0x700] sm:$0xff] }
  0xd3   : > { %1139 = vmatpush1.bf16.msra.mxu1 %v1138_v5  ;;  %v1160_v5 = vpack.c.bf16 %v431_v0, %v429_v63  ;;  %v571_v40 = vld [vmem:[%s1881_s12 + $0x718] sm:$0xff]  ;;  %v570_v48 = vld [vmem:[%s1881_s12 + $0x710] sm:$0xff]  ;;  %v573_v51 = vld [vmem:[%s1881_s12 + $0x728] sm:$0xff] }
  0xd4   : > { %1267 = vmatpush1.bf16.msra.mxu0 %v1266_v6  ;;  %1141 = vmatprep.subr.bf16.mxu1 %v1140_v7  ;;  %v428_v6 = vld [vmem:[%s1881_s12 + $0x2a0] sm:$0xff]  ;;  %v430_v7 = vld [vmem:[%s1881_s12 + $0x2b0] sm:$0xff]  ;;  %v1300_v47 = vpack.c.bf16 %v571_v40, %v569_v39  ;;  %v447_v50 = vld [vmem:[%s1881_s12 + $0x338] sm:$0xff]  ;;  %v1302_v54 = vpack.c.bf16 %v570_v48, %v568_v46 }
  0xd5   : > { %1269 = vmatprep.subr.bf16.mxu0 %v1268_v11  ;;  %v433_v11 = vld [vmem:[%s1881_s12 + $0x2c8] sm:$0xff]  ;;  %v1162_v15 = vpack.c.bf16 %v430_v7, %v428_v6  ;;  %v575_v52 = vld [vmem:[%s1881_s12 + $0x738] sm:$0xff]  ;;  %v572_v58 = vld [vmem:[%s1881_s12 + $0x720] sm:$0xff] }
  0xd6   : > { %665 = vmatmul.mubr.f32.vlgmr.msra.gmra.mrb[0].mxu1 %v336_v17  ;;  %v1290_v17 = vpack.c.bf16 %v558_v10, %v556_v8  ;;  %v1304_v59 = vpack.c.bf16 %v575_v52, %v573_v51  ;;  %v574_v60 = vld [vmem:[%s1881_s12 + $0x730] sm:$0xff]  ;;  %v451_v62 = vld [vmem:[%s1881_s12 + $0x358] sm:$0xff]  ;;  %v577_v63 = vld [vmem:[%s1881_s12 + $0x748] sm:$0xff] }
  0xd7   : > { %1143 = vmatpush1.bf16.msra.mxu1 %v1142_v18  ;;  %807 = vmatmul.mubr.f32.vlgmr.msra.gmra.mrb[0].mxu0 %v340_v19  ;;  %v1164_v18 = vpack.c.bf16 %v435_v12, %v433_v11  ;;  %v434_v19 = vld [vmem:[%s1881_s12 + $0x2d0] sm:$0xff]  ;;  %v579_v0 = vld [vmem:[%s1881_s12 + $0x758] sm:$0xff]  ;;  %v1306_v2 = vpack.c.bf16 %v574_v60, %v572_v58  ;;  %v576_v6 = vld [vmem:[%s1881_s12 + $0x740] sm:$0xff] }
  0xd8   : > { %1271 = vmatpush1.bf16.msra.mxu0 %v1270_v20  ;;  %1145 = vmatprep.subr.bf16.mxu1 %v1144_v21  ;;  %v560_v20 = vld [vmem:[%s1881_s12 + $0x6c0] sm:$0xff]  ;;  %v562_v21 = vld [vmem:[%s1881_s12 + $0x6d0] sm:$0xff]  ;;  %v1166_v29 = vpack.c.bf16 %v434_v19, %v432_v16  ;;  %v1308_v7 = vpack.c.bf16 %v579_v0, %v577_v63  ;;  %v455_v10 = vld [vmem:[%s1881_s12 + $0x378] sm:$0xff] }
  0xd9   : > { %1273 = vmatprep.subr.bf16.mxu0 %v1272_v25  ;;  %v339_v25 = vld [vmem:[%s1874_s24 + $0x18] sm:$0xff]  ;;  %877 = vmatprep.mubr.f32.mxu0 %v343_v28  ;;  %v1294_v30 = vpack.c.bf16 %v562_v21, %v560_v20  ;;  %v578_v8 = vld [vmem:[%s1881_s12 + $0x750] sm:$0xff]  ;;  %v581_v11 = vld [vmem:[%s1881_s12 + $0x768] sm:$0xff] }
  0xda   : > { %735 = vmatprep.mubr.f32.mxu1 %v339_v25  ;;  %v583_v12 = vld [vmem:[%s1881_s12 + $0x778] sm:$0xff]  ;;  %v1310_v14 = vpack.c.bf16 %v578_v8, %v576_v6  ;;  %v452_v16 = vld [vmem:[%s1881_s12 + $0x360] sm:$0xff]  ;;  %v582_v20 = vld [vmem:[%s1881_s12 + $0x770] sm:$0xff] }
  0xdb   : > { %1147 = vmatpush1.bf16.msra.mxu1 %v1146_v31  ;;  %v1168_v31 = vpack.c.bf16 %v439_v24, %v437_v23  ;;  %v1312_v19 = vpack.c.bf16 %v583_v12, %v581_v11  ;;  %v457_v21 = vld [vmem:[%s1881_s12 + $0x388] sm:$0xff]  ;;  %v587_v24 = vld [vmem:[%s1881_s12 + $0x798] sm:$0xff]  ;;  %v456_v28 = vld [vmem:[%s1881_s12 + $0x380] sm:$0xff] }
  0xdc   : > { %1275 = vmatpush1.bf16.msra.mxu0 %v1274_v32  ;;  %1149 = vmatprep.subr.bf16.mxu1 %v1148_v33  ;;  %v436_v32 = vld [vmem:[%s1881_s12 + $0x2e0] sm:$0xff]  ;;  %v438_v33 = vld [vmem:[%s1881_s12 + $0x2f0] sm:$0xff]  ;;  %v585_v23 = vld [vmem:[%s1881_s12 + $0x788] sm:$0xff] }
  0xdd   : > { %1277 = vmatprep.subr.bf16.mxu0 %v1276_v37  ;;  %v441_v37 = vld [vmem:[%s1881_s12 + $0x308] sm:$0xff]  ;;  %v1170_v41 = vpack.c.bf16 %v438_v33, %v436_v32  ;;  %v586_v32 = vld [vmem:[%s1881_s12 + $0x790] sm:$0xff]  ;;  %v463_v34 = vld [vmem:[%s1881_s12 + $0x3b8] sm:$0xff] }
  0xde   : > { %v461_v33 = vld [vmem:[%s1881_s12 + $0x3a8] sm:$0xff]  ;;  %v591_v36 = vld [vmem:[%s1881_s12 + $0x7b8] sm:$0xff]  ;;  %v460_v40 = vld [vmem:[%s1881_s12 + $0x3a0] sm:$0xff] }
  0xdf   : > { %1151 = vmatpush1.bf16.msra.mxu1 %v1150_v43  ;;  %v1172_v43 = vpack.c.bf16 %v443_v38, %v441_v37  ;;  %v1192_v39 = vpack.c.bf16 %v463_v34, %v461_v33  ;;  %v467_v46 = vld [vmem:[%s1881_s12 + $0x3d8] sm:$0xff]  ;;  %v464_v52 = vld [vmem:[%s1881_s12 + $0x3c0] sm:$0xff]  ;;  %v342_v8 = vld [vmem:[%s1874_s24 + $0x30] sm:$0xff] }
  0xe0   : > { %1279 = vmatpush1.bf16.msra.mxu0 %v1278_v44  ;;  %1153 = vmatprep.subr.bf16.mxu1 %v1152_v45  ;;  %v440_v44 = vld [vmem:[%s1881_s12 + $0x300] sm:$0xff]  ;;  %v442_v45 = vld [vmem:[%s1881_s12 + $0x310] sm:$0xff]  ;;  %v595_v48 = vld [vmem:[%s1881_s12 + $0x7d8] sm:$0xff] }
  0xe1   : > { %1281 = vmatprep.subr.bf16.mxu0 %v1280_v49  ;;  %v445_v49 = vld [vmem:[%s1881_s12 + $0x328] sm:$0xff]  ;;  %v1174_v53 = vpack.c.bf16 %v442_v45, %v440_v44  ;;  %v590_v44 = vld [vmem:[%s1881_s12 + $0x7b0] sm:$0xff]  ;;  %v471_v58 = vld [vmem:[%s1881_s12 + $0x3f8] sm:$0xff] }
  0xe2   : > { %v465_v45 = vld [vmem:[%s1881_s12 + $0x3c8] sm:$0xff]  ;;  %v599_v60 = vld [vmem:[%s1881_s12 + $0x7f8] sm:$0xff]  ;;  %v468_v0 = vld [vmem:[%s1881_s12 + $0x3e0] sm:$0xff] }
  0xe3   : > { %1155 = vmatpush1.bf16.msra.mxu1 %v1154_v55  ;;  %v1176_v55 = vpack.c.bf16 %v447_v50, %v445_v49  ;;  %v1196_v51 = vpack.c.bf16 %v467_v46, %v465_v45 }
  0xe4   : > { %1283 = vmatpush1.bf16.msra.mxu0 %v1282_v56  ;;  %1157 = vmatprep.subr.bf16.mxu1 %v1156_v57  ;;  %v444_v56 = vld [vmem:[%s1881_s12 + $0x320] sm:$0xff]  ;;  %v446_v57 = vld [vmem:[%s1881_s12 + $0x330] sm:$0xff] }
  0xe5   : > { %1285 = vmatprep.subr.bf16.mxu0 %v1284_v61  ;;  %v449_v61 = vld [vmem:[%s1881_s12 + $0x348] sm:$0xff]  ;;  %v1178_v1 = vpack.c.bf16 %v446_v57, %v444_v56  ;;  %v594_v56 = vld [vmem:[%s1881_s12 + $0x7d0] sm:$0xff] }
  0xe6   : > { %v469_v57 = vld [vmem:[%s1881_s12 + $0x3e8] sm:$0xff] }
  0xe7   : > { %1159 = vmatpush1.bf16.msra.mxu1 %v1158_v3  ;;  %v1180_v3 = vpack.c.bf16 %v451_v62, %v449_v61  ;;  %v1200_v63 = vpack.c.bf16 %v471_v58, %v469_v57 }
  0xe8   : > { %1287 = vmatpush1.bf16.msra.mxu0 %v1286_v4  ;;  %1161 = vmatprep.subr.bf16.mxu1 %v1160_v5  ;;  %v448_v4 = vld [vmem:[%s1881_s12 + $0x340] sm:$0xff]  ;;  %v450_v5 = vld [vmem:[%s1881_s12 + $0x350] sm:$0xff] }
  0xe9   : > { %1289 = vmatprep.subr.bf16.mxu0 %v1288_v9  ;;  %v453_v9 = vld [vmem:[%s1881_s12 + $0x368] sm:$0xff]  ;;  %v1182_v13 = vpack.c.bf16 %v450_v5, %v448_v4  ;;  %v598_v4 = vld [vmem:[%s1881_s12 + $0x7f0] sm:$0xff] }
  0xeb   : > { %1163 = vmatpush1.bf16.msra.mxu1 %v1162_v15  ;;  %v1184_v15 = vpack.c.bf16 %v455_v10, %v453_v9  ;;  %v334_v10 = vld [vmem:[#allocation2] sm:$0xff] }
  0xec   : > { %1291 = vmatpush1.bf16.msra.mxu0 %v1290_v17  ;;  %1165 = vmatprep.subr.bf16.mxu1 %v1164_v18  ;;  %v454_v17 = vld [vmem:[%s1881_s12 + $0x370] sm:$0xff]  ;;  %v580_v18 = vld [vmem:[%s1881_s12 + $0x760] sm:$0xff] }
  0xed   : > { %1293 = vmatprep.subr.bf16.mxu0 %v1292_v22  ;;  %v459_v22 = vld [vmem:[%s1881_s12 + $0x398] sm:$0xff]  ;;  %v1186_v25 = vpack.c.bf16 %v454_v17, %v452_v16  ;;  %v1314_v26 = vpack.c.bf16 %v582_v20, %v580_v18 }
  0xee   : > { %v1188_v27 = vpack.c.bf16 %v459_v22, %v457_v21  ;;  %v894_v21 = vld [vmem:[#allocation8] sm:$0x3] (!%p1068_p13) }
  0xef   : > { %1167 = vmatpush1.bf16.msra.mxu1 %v1166_v29  ;;  %v458_v29 = vld [vmem:[%s1881_s12 + $0x390] sm:$0xff] }
  0xf0   : > { %1295 = vmatpush1.bf16.msra.mxu0 %v1294_v30  ;;  %1169 = vmatprep.subr.bf16.mxu1 %v1168_v31  ;;  %v584_v30 = vld [vmem:[%s1881_s12 + $0x780] sm:$0xff]  ;;  %v1316_v31 = vpack.c.bf16 %v587_v24, %v585_v23  ;;  %v1190_v37 = vpack.c.bf16 %v458_v29, %v456_v28 }
  0xf1   : > { %1297 = vmatprep.subr.bf16.mxu0 %v1296_v35  ;;  %v589_v35 = vld [vmem:[%s1881_s12 + $0x7a8] sm:$0xff]  ;;  %v1318_v38 = vpack.c.bf16 %v586_v32, %v584_v30 }
  0xf2   : > { %v910_v30 = vld [vmem:[#allocation9] sm:$0xff] (!%p1068_p13) }
  0xf3   : > { %1171 = vmatpush1.bf16.msra.mxu1 %v1170_v41  ;;  %v462_v41 = vld [vmem:[%s1881_s12 + $0x3b0] sm:$0xff] }
  0xf4   : > { %1299 = vmatpush1.bf16.msra.mxu0 %v1298_v42  ;;  %1173 = vmatprep.subr.bf16.mxu1 %v1172_v43  ;;  %v588_v42 = vld [vmem:[%s1881_s12 + $0x7a0] sm:$0xff]  ;;  %v1320_v43 = vpack.c.bf16 %v591_v36, %v589_v35  ;;  %v1194_v49 = vpack.c.bf16 %v462_v41, %v460_v40 }
  0xf5   : > { %1301 = vmatprep.subr.bf16.mxu0 %v1300_v47  ;;  %v593_v47 = vld [vmem:[%s1881_s12 + $0x7c8] sm:$0xff]  ;;  %v1322_v50 = vpack.c.bf16 %v590_v44, %v588_v42 }
  0xf7   : > { %1175 = vmatpush1.bf16.msra.mxu1 %v1174_v53  ;;  %v466_v53 = vld [vmem:[%s1881_s12 + $0x3d0] sm:$0xff] }
  0xf8   : > { %1303 = vmatpush1.bf16.msra.mxu0 %v1302_v54  ;;  %1177 = vmatprep.subr.bf16.mxu1 %v1176_v55  ;;  %v592_v54 = vld [vmem:[%s1881_s12 + $0x7c0] sm:$0xff]  ;;  %v1324_v55 = vpack.c.bf16 %v595_v48, %v593_v47  ;;  %v1198_v61 = vpack.c.bf16 %v466_v53, %v464_v52 }
  0xf9   : > { %1305 = vmatprep.subr.bf16.mxu0 %v1304_v59  ;;  %v597_v59 = vld [vmem:[%s1881_s12 + $0x7e8] sm:$0xff]  ;;  %v1326_v62 = vpack.c.bf16 %v594_v56, %v592_v54 }
  0xfb   : > { %1179 = vmatpush1.bf16.msra.mxu1 %v1178_v1  ;;  %v470_v1 = vld [vmem:[%s1881_s12 + $0x3f0] sm:$0xff] }
  0xfc   : > { %1307 = vmatpush1.bf16.msra.mxu0 %v1306_v2  ;;  %1181 = vmatprep.subr.bf16.mxu1 %v1180_v3  ;;  %v1328_v2 = vpack.c.bf16 %v599_v60, %v597_v59  ;;  %v596_v3 = vld [vmem:[%s1881_s12 + $0x7e0] sm:$0xff]  ;;  %v1202_v5 = vpack.c.bf16 %v470_v1, %v468_v0 }
  0xfd   : > { %1309 = vmatprep.subr.bf16.mxu0 %v1308_v7  ;;  %v1330_v6 = vpack.c.bf16 %v598_v4, %v596_v3  ;;  %v338_v7 = vld [vmem:[%s1874_s24 + $0x10] sm:$0xff] }
  0xff   : > { %1183 = vmatpush1.bf16.msra.mxu1 %v1182_v13 }
 0x100   : > { %1311 = vmatpush1.bf16.msra.mxu0 %v1310_v14  ;;  %1185 = vmatprep.subr.bf16.mxu1 %v1184_v15  ;;  %v335_v14 = vld [vmem:[#allocation2 + $0x8] sm:$0xff] }
 0x101   : > { %1313 = vmatprep.subr.bf16.mxu0 %v1312_v19  ;;  %v896_v19 = vlaneseq (!%p1068_p13) }
 0x103   : > { %1187 = vmatpush1.bf16.msra.mxu1 %v1186_v25  ;;  %v897_v20 = vshrl.u32 (!%p1068_p13), %v896_v19, 7 }
 0x104   : > { %1315 = vmatpush1.bf16.msra.mxu0 %v1314_v26  ;;  %1189 = vmatprep.subr.bf16.mxu1 %v1188_v27 }
 0x105   : > { %1317 = vmatprep.subr.bf16.mxu0 %v1316_v31  ;;  %v898_v22 = vsub.s32 (!%p1068_p13), 0, %v897_v20  ;;  %v902_v23 = vsub.s32 (!%p1068_p13), 1, %v897_v20  ;;  %v911_v31 = vld [vmem:[#allocation9 + $0x8] sm:$0xff] (!%p1068_p13) }
 0x107   : > { %1191 = vmatpush1.bf16.msra.mxu1 %v1190_v37  ;;  %v899_v26 = vrot.slane (!%p1068_p13), %v894_v21, %v898_v22  ;;  %v903_v27 = vrot.slane (!%p1068_p13), %v894_v21, %v902_v23 }
 0x108   : > { %1319 = vmatpush1.bf16.msra.mxu0 %v1318_v38  ;;  %1193 = vmatprep.subr.bf16.mxu1 %v1192_v39 }
 0x109   : > { %1321 = vmatprep.subr.bf16.mxu0 %v1320_v43 }
 0x10b   : > { %1195 = vmatpush1.bf16.msra.mxu1 %v1194_v49 }
 0x10c   : > { %1323 = vmatpush1.bf16.msra.mxu0 %v1322_v50  ;;  %1197 = vmatprep.subr.bf16.mxu1 %v1196_v51 }
 0x10d   : > { %1325 = vmatprep.subr.bf16.mxu0 %v1324_v55 }
 0x10f   : > { %1199 = vmatpush1.bf16.msra.mxu1 %v1198_v61 }
 0x110   : > { %1327 = vmatpush1.bf16.msra.mxu0 %v1326_v62  ;;  %1201 = vmatprep.subr.bf16.mxu1 %v1200_v63 }
 0x111   : > { %1329 = vmatprep.subr.bf16.mxu0 %v1328_v2 }
 0x113   : > { %1203 = vmatpush1.bf16.msra.mxu1 %v1202_v5 }
 0x114   : > { %1331 = vmatpush1.bf16.msra.mxu0 %v1330_v6 }
 0x116   : > { %736 = vmatmul.mubr.f32.vlgmr.msra.gmra.mrb[0].mxu1 %v338_v7 }
 0x117   : > { %878 = vmatmul.mubr.f32.vlgmr.msra.gmra.mrb[0].mxu0 %v342_v8 }
 0x1e9   : > { %v737_v9 = vpop.f32.mrb[0].mxu1 }
 0x1ea   : > { %v879_v11 = vpop.f32.mrb[0].mxu0  ;;  %v739_v12 = vpop.f32.mrb[1].mxu1  ;;  %891 = sbr.rel (%p1068_p13) target bundleno = 511 (0x1ff), region = 60 }
 0x1eb   : > { %v1332_v13 = vadd.f32 %v879_v11, %v737_v9  ;;  %v881_v15 = vpop.f32.mrb[1].mxu0 }
 0x1ec   : > { %v1333_v16 = vadd.f32 %v881_v15, %v739_v12 }
 0x1ed   : > { %v884_v17 = vadd.f32 %v1332_v13, %v334_v10 }
 0x1ee   : > { %v885_v18 = vadd.f32 %v1333_v16, %v335_v14 }
 0x1ef   : > { %886 = vst [vmem:[#allocation2] sm:$0xff] %v884_v17 }
 0x1f0   : > { %887 = vst [vmem:[#allocation2 + $0x8] sm:$0xff] %v885_v18 }
 0x1f6   : > { %v892_v24 = vld [vmem:[#allocation2] sm:$0xff] }
 0x1f7   : > { %v893_v25 = vld [vmem:[#allocation2 + $0x8] sm:$0xff]  ;;  %v906_v28 = vadd.f32 %v899_v26, %v892_v24 }
 0x1f8   : > { %v907_v29 = vadd.f32 %v903_v27, %v893_v25 }
 0x1f9   : > { %v908_v32 = vmax.f32 %v906_v28, 0.0 }
 0x1fa   : > { %v909_v33 = vmax.f32 %v907_v29, 0.0 }
 0x1fb   : > { %v912_v34 = vmul.f32 %v910_v30, %v908_v32 }
 0x1fc   : > { %v913_v35 = vmul.f32 %v911_v31, %v909_v33 }
 0x1fd   : > { %914 = vst [vmem:[#allocation11] sm:$0xff] %v912_v34 }
 0x1fe   : > { %915 = vst [vmem:[#allocation11 + $0x8] sm:$0xff] %v913_v35 }
 0x1ff PF: > { %p1373_p2 = scmp.eq.s32.totalorder %s1701_s21, 2  ;;  %s1646_s18 = smov [#allocation11]  }
 0x200   : > { %s928_s22 = sshll.u32 %s1646_s18, 4  ;;  %s929_s22 = int_to_ptr.vmem [resolvable:$true] %s928_s22 }
 0x201   : > { %s1545_s23 = scalar_lea.vmem %s929_s22, 256  ;;  %p1552_p8 = scmp.lt.s32.totalorder %s929_s22, %s929_s22 }
 0x202   : > { %p1546_p3 = scmp.ne.s32.totalorder %s929_s22, %s1545_s23  ;;  %p1553_p1 = scmp.lt.s32.totalorder %s1545_s23, %s1545_s23 }
 0x204   : > { %p1547_p0 = pnand %p1546_p3, %p1373_p2  ;;  %p1554_p12 = por %p1553_p1, %p1552_p8 }
 0x206   : > { %p1548_p6 = pneg %p1547_p0 }
 0x208   : > { %p1555_p9 = pnand %p1554_p12, %p1548_p6 }
 0x20a   : > { %1558 = shalt.err (!%p1555_p9)
}
 0x20b   : > { %s1559_s30 = scalar_lea.hbm %s2206_s4, 256 }
 0x20c   : > { %p1560_p7 = scmp.ne.s32.totalorder %s2206_s4, %s1559_s30  ;;  %p1565_p10 = scmp.lt.u32.totalorder %s1559_s30, %s2206_s4 }
 0x20e   : > { %p1561_p4 = pnand %p1560_p7, %p1373_p2 }
 0x210   : > { %p1562_p5 = pneg %p1561_p4 }
 0x212   : > { %p1567_p11 = pnand %p1565_p10, %p1562_p5 }
 0x214   : > { %1570 = shalt.err (!%p1567_p11)
}
 0x215   : > { %1351 = dma.vmem_to_hbm [thread:$0]  (%p1373_p2), %s929_s22, 256, %s2206_s4, [#allocation5]  }
 0x216   : > { %1612 = dma.done.wait (%p1373_p2), [#allocation5], 256  }
 0x217   : > { %1614 = vsyncadd (%p1373_p2), [#allocation5], 4294967040 }
 0x218 PF: > { %s22_s20 = sadd.s32 1, %s1637_s20   ;;  %s2220_s15 = smov %s1621_s16 }
 0x219   : > { %p19_p13 = scmp.ge.s32.totalorder %s22_s20, 5   ;;  %s2221_s16 = smov %s1625_s17 }
 0x21a   : > { %s2222_s17 = smov %s1790_s11  ;;  %s2223_s18 = smov %s1633_s19 }
 0x21b   : > { %s2224_s19 = smov %s2226_s7  ;;  %21 = sbr.rel (!%p19_p13) target bundleno = 8 (0x8), region = 105 }
 0x222   :  { %941 = vsyncpa [#allocation4], 1 }
 0x223   :  { %943 = vsyncpa [#allocation4 + $0x1], 1 }
 0x224   :  { %944 = vsyncpa [#allocation7], 1 }
 0x225   :  { %946 = vsyncpa [#allocation7 + $0x1], 1 }
 0x226   :  { %947 = vsyncpa [#allocation10], 1 }
 0x227   :  { %948 = vsyncpa [#allocation5], 1 }
 0x228   :  { %950 = vsyncpa [#allocation5 + $0x1], 1 }

</bundles_post_ra>
